<compile_context>
chip_gen: v7x
topology: tpu7x:2x2x1
jax: 0.10.0
libtpu: 0.0.40
codegen_flags: <defaults>
</compile_context>

<pallas_src>
import functools

import jax
import jax.numpy as jnp
from jax.experimental import pallas as pl
from jax.experimental.pallas import tpu as pltpu


_VMEM = pl.BlockSpec(memory_space=pltpu.MemorySpace.VMEM)


# ---------------------------------------------------------------------------
# Fused kernel: (RNN_x || RNN_y) recurrence + combiner_12_0.lin_hidden_to_loc
# ---------------------------------------------------------------------------
def fused_infodpcca_kernel(x_ref, y_ref, w_ihx_ref, w_ihy_ref, w_hh_ref, b_ref,
                           h0_ref, w_loc_ref, b_loc_ref, out_ref,
                           proj_scr, h_hist_scr):
    """Shapes (time-major, flattened over (T-1, B)), H = Hx + Hy:
      x_ref:      (T1*B, Dx)     inputs at timesteps 0..T-2
      y_ref:      (T1*B, Dy)
      w_ihx_ref:  (Dx, H)        [W_ih_x^T | 0]
      w_ihy_ref:  (Dy, H)        [0 | W_ih_y^T]
      w_hh_ref:   (H, H)         block-diag(W_hh_x^T, W_hh_y^T)
      b_ref:      (1, H)         concat(b_ih_x + b_hh_x, b_ih_y + b_hh_y)
      h0_ref:     (B, H)         concat(h_x_0, h_y_0) broadcast over batch
      w_loc_ref:  (H, Z)         combiner_12_0.lin_hidden_to_loc.weight^T
      b_loc_ref:  (1, Z)
      out_ref:    (T1*B, Z)      recon_z_loc, time-major flattened
      proj_scr:   (T1*B, H)      VMEM scratch (hoisted input projection)
      h_hist_scr: (T1*B, H)      VMEM scratch (hidden-state history)
    """
    TB = x_ref.shape[0]
    B = h0_ref.shape[0]
    T1 = TB // B                                   # static python int

    # --- hoisted input projection: big MXU matmuls over ALL timesteps -------
    proj_scr[...] = (
        jnp.dot(x_ref[...], w_ihx_ref[...], preferred_element_type=jnp.float32)
        + jnp.dot(y_ref[...], w_ihy_ref[...], preferred_element_type=jnp.float32)
        + b_ref[...])

    w_hh = w_hh_ref[...]
    h = h0_ref[...]                                # (B, H), carried in vregs

    # --- sequential recurrence: one dependent (B,H)x(H,H) matmul per step ---
    # Fully unrolled (T1 static); hidden state never round-trips through VMEM.
    for t in range(T1):
        pre = proj_scr[t * B:(t + 1) * B, :] + jnp.dot(
            h, w_hh, preferred_element_type=jnp.float32)
        h = jnp.maximum(pre, 0.0)
        h_hist_scr[t * B:(t + 1) * B, :] = h

    # --- loc Linear over all timesteps: ONE matmul + ONE block store --------
    loc = (jnp.dot(h_hist_scr[...], w_loc_ref[...],
                   preferred_element_type=jnp.float32) + b_loc_ref[...])
    out_ref[...] = loc.astype(out_ref.dtype)


# ---------------------------------------------------------------------------
# InfoDPCCA.forward wrapper
# ---------------------------------------------------------------------------
@jax.jit
def infodpcca_forward(params, mini_batch_x, mini_batch_y):
    """mini_batch_x: (B, T, x_dim), mini_batch_y: (B, T, y_dim) (batch_first).
    Returns recon_z_loc: (B, T-1, z0_dim)."""
    f32 = jnp.float32
    B, T, Dx = mini_batch_x.shape
    Dy = mini_batch_y.shape[2]
    Hx = params["rnn_x_w_ih"].shape[0]
    Hy = params["rnn_y_w_ih"].shape[0]
    H = Hx + Hy
    Z = params["comb12_loc_w"].shape[0]
    T1 = T - 1

    # --- weight prep: fuse the two independent RNNs into one recurrence -----
    w_ihx = jnp.zeros((Dx, H), f32).at[:, :Hx].set(params["rnn_x_w_ih"].T)
    w_ihy = jnp.zeros((Dy, H), f32).at[:, Hx:].set(params["rnn_y_w_ih"].T)
    w_hh = jnp.zeros((H, H), f32)
    w_hh = w_hh.at[:Hx, :Hx].set(params["rnn_x_w_hh"].T)
    w_hh = w_hh.at[Hx:, Hx:].set(params["rnn_y_w_hh"].T)
    b = jnp.concatenate(
        [params["rnn_x_b_ih"] + params["rnn_x_b_hh"],
         params["rnn_y_b_ih"] + params["rnn_y_b_hh"]]).reshape(1, H).astype(f32)
    h0 = jnp.concatenate(
        [jnp.broadcast_to(params["h_x_0"][0, 0], (B, Hx)),
         jnp.broadcast_to(params["h_y_0"][0, 0], (B, Hy))], axis=-1).astype(f32)
    w_loc = params["comb12_loc_w"].T.astype(f32)        # (H, Z)
    b_loc = params["comb12_loc_b"].reshape(1, Z).astype(f32)

    # forward() only uses RNN outputs at timesteps 0..T-2 -> only those inputs
    # are needed.  Time-major flatten so timestep t is rows [t*B, (t+1)*B).
    x_tm = jnp.transpose(mini_batch_x[:, :T1], (1, 0, 2)).reshape(T1 * B, Dx)
    y_tm = jnp.transpose(mini_batch_y[:, :T1], (1, 0, 2)).reshape(T1 * B, Dy)

    out = pl.pallas_call(
        fused_infodpcca_kernel,
        out_shape=jax.ShapeDtypeStruct((T1 * B, Z), f32),
        in_specs=[_VMEM] * 9,
        out_specs=_VMEM,
        scratch_shapes=[pltpu.VMEM((T1 * B, H), f32),    # proj_scr
                        pltpu.VMEM((T1 * B, H), f32)],   # h_hist_scr
    )(x_tm.astype(f32), y_tm.astype(f32),
      w_ihx, w_ihy, w_hh, b, h0, w_loc, b_loc)

    return jnp.transpose(out.reshape(T1, B, Z), (1, 0, 2))   # (B, T-1, Z)


# ---------------------------------------------------------------------------
# Pure-JAX reference (for sanity checking the kernel)
# ---------------------------------------------------------------------------
def reference_forward(params, x, y):
    def rnn(seq_tbd, w_ih, w_hh, b_ih, b_hh, h0):
        def step(h, x_t):
            h_new = jax.nn.relu(x_t @ w_ih.T + b_ih + h @ w_hh.T + b_hh)
            return h_new, h_new
        _, hs = jax.lax.scan(step, h0, seq_tbd)
        return hs                                    # (T, B, H)

    B = x.shape[0]
    x_tbd = jnp.transpose(x, (1, 0, 2))
    y_tbd = jnp.transpose(y, (1, 0, 2))
    h_x0 = jnp.broadcast_to(params["h_x_0"][0, 0], (B, params["h_x_0"].shape[-1]))
    h_y0 = jnp.broadcast_to(params["h_y_0"][0, 0], (B, params["h_y_0"].shape[-1]))
    hx = rnn(x_tbd, params["rnn_x_w_ih"], params["rnn_x_w_hh"],
             params["rnn_x_b_ih"], params["rnn_x_b_hh"], h_x0)
    hy = rnn(y_tbd, params["rnn_y_w_ih"], params["rnn_y_w_hh"],
             params["rnn_y_b_ih"], params["rnn_y_b_hh"], h_y0)
    h = jnp.concatenate([hx, hy], axis=-1)[:-1]      # (T-1, B, Hx+Hy)
    loc = h @ params["comb12_loc_w"].T + params["comb12_loc_b"]
    return jnp.transpose(loc, (1, 0, 2))


# ---------------------------------------------------------------------------
# Deterministic parameter init (PyTorch-style uniform(-1/sqrt(fan), 1/sqrt(fan)))
# ---------------------------------------------------------------------------
def init_params(key, x_dim, y_dim, z0_dim, rnn_x_dim, rnn_y_dim):
    def uni(k, shape, fan):
        lim = 1.0 / jnp.sqrt(jnp.float32(fan))
        return jax.random.uniform(k, shape, jnp.float32, -lim, lim)

    ks = jax.random.split(key, 12)
    return {
        # rnn_x
        "rnn_x_w_ih": uni(ks[0], (rnn_x_dim, x_dim), rnn_x_dim),
        "rnn_x_w_hh": uni(ks[1], (rnn_x_dim, rnn_x_dim), rnn_x_dim),
        "rnn_x_b_ih": uni(ks[2], (rnn_x_dim,), rnn_x_dim),
        "rnn_x_b_hh": uni(ks[3], (rnn_x_dim,), rnn_x_dim),
        # rnn_y
        "rnn_y_w_ih": uni(ks[4], (rnn_y_dim, y_dim), rnn_y_dim),
        "rnn_y_w_hh": uni(ks[5], (rnn_y_dim, rnn_y_dim), rnn_y_dim),
        "rnn_y_b_ih": uni(ks[6], (rnn_y_dim,), rnn_y_dim),
        "rnn_y_b_hh": uni(ks[7], (rnn_y_dim,), rnn_y_dim),
        # combiner_12_0.lin_hidden_to_loc (the only combiner piece forward() uses)
        "comb12_loc_w": uni(ks[8], (z0_dim, rnn_x_dim + rnn_y_dim),
                            rnn_x_dim + rnn_y_dim),
        "comb12_loc_b": uni(ks[9], (z0_dim,), rnn_x_dim + rnn_y_dim),
        # initial hidden states (nn.Parameter zeros)
        "h_x_0": jnp.zeros((1, 1, rnn_x_dim), jnp.float32),
        "h_y_0": jnp.zeros((1, 1, rnn_y_dim), jnp.float32),
    }


if __name__ == "__main__":
    # small shapes consistent with the module's forward
    B, T = 2, 8
    x_dim, y_dim = 16, 12
    z0_dim = 8
    rnn_x_dim, rnn_y_dim = 32, 24

    key = jax.random.PRNGKey(0)
    kp, kx, ky = jax.random.split(key, 3)
    params = init_params(kp, x_dim, y_dim, z0_dim, rnn_x_dim, rnn_y_dim)

    mini_batch_x = jax.random.normal(kx, (B, T, x_dim), jnp.float32)
    mini_batch_y = jax.random.normal(ky, (B, T, y_dim), jnp.float32)

    recon_z_loc = infodpcca_forward(params, mini_batch_x, mini_batch_y)
    recon_z_loc = jax.block_until_ready(recon_z_loc)

    assert recon_z_loc.shape == (B, T - 1, z0_dim), recon_z_loc.shape

    ref = reference_forward(params, mini_batch_x, mini_batch_y)
    assert jnp.allclose(recon_z_loc, ref, atol=1e-3, rtol=1e-3), (
        float(jnp.max(jnp.abs(recon_z_loc - ref))))

    print("KERNEL_OK")
</pallas_src>

<mosaic_0001>
module attributes {stable_mosaic.version = 11 : i64} {
  func.func @fused_infodpcca_kernel(%arg0: memref<14x16xf32, #tpu.memory_space<vmem>>, %arg1: memref<14x12xf32, #tpu.memory_space<vmem>>, %arg2: memref<16x56xf32, #tpu.memory_space<vmem>>, %arg3: memref<12x56xf32, #tpu.memory_space<vmem>>, %arg4: memref<56x56xf32, #tpu.memory_space<vmem>>, %arg5: memref<1x56xf32, #tpu.memory_space<vmem>>, %arg6: memref<2x56xf32, #tpu.memory_space<vmem>>, %arg7: memref<56x8xf32, #tpu.memory_space<vmem>>, %arg8: memref<1x8xf32, #tpu.memory_space<vmem>>, %arg9: memref<14x8xf32, #tpu.memory_space<vmem>>, %arg10: memref<14x56xf32, #tpu.memory_space<vmem>>, %arg11: memref<14x56xf32, #tpu.memory_space<vmem>>) attributes {dimension_semantics = [], scalar_prefetch = 0 : i64, scratch_operands = 2 : i64, tpu.core_type = #tpu.core_type<tc>} {
    %c0 = arith.constant 0 : index
    %c0_0 = arith.constant 0 : index
    %0 = vector.load %arg0[%c0, %c0_0] : memref<14x16xf32, #tpu.memory_space<vmem>>, vector<14x16xf32>
    %c0_1 = arith.constant 0 : index
    %c0_2 = arith.constant 0 : index
    %1 = vector.load %arg2[%c0_1, %c0_2] : memref<16x56xf32, #tpu.memory_space<vmem>>, vector<16x56xf32>
    %cst = arith.constant dense<0.000000e+00> : vector<14x56xf32>
    %2 = tpu.matmul %0, %1, %cst {dimension_numbers = #tpu.dot_dimension_numbers<[1], [0], [0], [1], [0, 0, 1, 1], [], []>} : vector<14x16xf32>, vector<16x56xf32>, vector<14x56xf32> -> vector<14x56xf32>
    %c0_3 = arith.constant 0 : index
    %c0_4 = arith.constant 0 : index
    %3 = vector.load %arg1[%c0_3, %c0_4] : memref<14x12xf32, #tpu.memory_space<vmem>>, vector<14x12xf32>
    %c0_5 = arith.constant 0 : index
    %c0_6 = arith.constant 0 : index
    %4 = vector.load %arg3[%c0_5, %c0_6] : memref<12x56xf32, #tpu.memory_space<vmem>>, vector<12x56xf32>
    %cst_7 = arith.constant dense<0.000000e+00> : vector<14x56xf32>
    %5 = tpu.matmul %3, %4, %cst_7 {dimension_numbers = #tpu.dot_dimension_numbers<[1], [0], [0], [1], [0, 0, 1, 1], [], []>} : vector<14x12xf32>, vector<12x56xf32>, vector<14x56xf32> -> vector<14x56xf32>
    %6 = arith.addf %2, %5 : vector<14x56xf32>
    %c0_8 = arith.constant 0 : index
    %c0_9 = arith.constant 0 : index
    %7 = vector.load %arg5[%c0_8, %c0_9] : memref<1x56xf32, #tpu.memory_space<vmem>>, vector<1x56xf32>
    %8 = vector.broadcast %7 : vector<1x56xf32> to vector<14x56xf32>
    %9 = arith.addf %6, %8 : vector<14x56xf32>
    %c0_10 = arith.constant 0 : index
    %c0_11 = arith.constant 0 : index
    %10 = vector.load %arg10[%c0_10, %c0_11] : memref<14x56xf32, #tpu.memory_space<vmem>>, vector<14x56xf32>
    tpu.vector_store %arg10[%c0_10, %c0_11], %9 {strides = array<i32>} : memref<14x56xf32, #tpu.memory_space<vmem>>, vector<14x56xf32>,
    %c0_12 = arith.constant 0 : index
    %c0_13 = arith.constant 0 : index
    %11 = vector.load %arg4[%c0_12, %c0_13] : memref<56x56xf32, #tpu.memory_space<vmem>>, vector<56x56xf32>
    %c0_14 = arith.constant 0 : index
    %c0_15 = arith.constant 0 : index
    %12 = vector.load %arg6[%c0_14, %c0_15] : memref<2x56xf32, #tpu.memory_space<vmem>>, vector<2x56xf32>
    %c0_16 = arith.constant 0 : index
    %c0_17 = arith.constant 0 : index
    %13 = vector.load %arg10[%c0_16, %c0_17] : memref<14x56xf32, #tpu.memory_space<vmem>>, vector<2x56xf32>
    %cst_18 = arith.constant dense<0.000000e+00> : vector<2x56xf32>
    %14 = tpu.matmul %12, %11, %cst_18 {dimension_numbers = #tpu.dot_dimension_numbers<[1], [0], [0], [1], [0, 0, 1, 1], [], []>} : vector<2x56xf32>, vector<56x56xf32>, vector<2x56xf32> -> vector<2x56xf32>
    %15 = arith.addf %13, %14 : vector<2x56xf32>
    %cst_19 = arith.constant 0.000000e+00 : f32
    %16 = vector.broadcast %cst_19 : f32 to vector<2x56xf32>
    %17 = arith.maximumf %15, %16 : vector<2x56xf32>
    %c0_20 = arith.constant 0 : index
    %c0_21 = arith.constant 0 : index
    %18 = vector.load %arg11[%c0_20, %c0_21] : memref<14x56xf32, #tpu.memory_space<vmem>>, vector<2x56xf32>
    tpu.vector_store %arg11[%c0_20, %c0_21], %17 {strides = array<i32>} : memref<14x56xf32, #tpu.memory_space<vmem>>, vector<2x56xf32>,
    %c2 = arith.constant 2 : index
    %c0_22 = arith.constant 0 : index
    %19 = vector.load %arg10[%c2, %c0_22] : memref<14x56xf32, #tpu.memory_space<vmem>>, vector<2x56xf32>
    %cst_23 = arith.constant dense<0.000000e+00> : vector<2x56xf32>
    %20 = tpu.matmul %17, %11, %cst_23 {dimension_numbers = #tpu.dot_dimension_numbers<[1], [0], [0], [1], [0, 0, 1, 1], [], []>} : vector<2x56xf32>, vector<56x56xf32>, vector<2x56xf32> -> vector<2x56xf32>
    %21 = arith.addf %19, %20 : vector<2x56xf32>
    %cst_24 = arith.constant 0.000000e+00 : f32
    %22 = vector.broadcast %cst_24 : f32 to vector<2x56xf32>
    %23 = arith.maximumf %21, %22 : vector<2x56xf32>
    %c2_25 = arith.constant 2 : index
    %c0_26 = arith.constant 0 : index
    %24 = vector.load %arg11[%c2_25, %c0_26] : memref<14x56xf32, #tpu.memory_space<vmem>>, vector<2x56xf32>
    tpu.vector_store %arg11[%c2_25, %c0_26], %23 {strides = array<i32>} : memref<14x56xf32, #tpu.memory_space<vmem>>, vector<2x56xf32>,
    %c4 = arith.constant 4 : index
    %c0_27 = arith.constant 0 : index
    %25 = vector.load %arg10[%c4, %c0_27] : memref<14x56xf32, #tpu.memory_space<vmem>>, vector<2x56xf32>
    %cst_28 = arith.constant dense<0.000000e+00> : vector<2x56xf32>
    %26 = tpu.matmul %23, %11, %cst_28 {dimension_numbers = #tpu.dot_dimension_numbers<[1], [0], [0], [1], [0, 0, 1, 1], [], []>} : vector<2x56xf32>, vector<56x56xf32>, vector<2x56xf32> -> vector<2x56xf32>
    %27 = arith.addf %25, %26 : vector<2x56xf32>
    %cst_29 = arith.constant 0.000000e+00 : f32
    %28 = vector.broadcast %cst_29 : f32 to vector<2x56xf32>
    %29 = arith.maximumf %27, %28 : vector<2x56xf32>
    %c4_30 = arith.constant 4 : index
    %c0_31 = arith.constant 0 : index
    %30 = vector.load %arg11[%c4_30, %c0_31] : memref<14x56xf32, #tpu.memory_space<vmem>>, vector<2x56xf32>
    tpu.vector_store %arg11[%c4_30, %c0_31], %29 {strides = array<i32>} : memref<14x56xf32, #tpu.memory_space<vmem>>, vector<2x56xf32>,
    %c6 = arith.constant 6 : index
    %c0_32 = arith.constant 0 : index
    %31 = vector.load %arg10[%c6, %c0_32] : memref<14x56xf32, #tpu.memory_space<vmem>>, vector<2x56xf32>
    %cst_33 = arith.constant dense<0.000000e+00> : vector<2x56xf32>
    %32 = tpu.matmul %29, %11, %cst_33 {dimension_numbers = #tpu.dot_dimension_numbers<[1], [0], [0], [1], [0, 0, 1, 1], [], []>} : vector<2x56xf32>, vector<56x56xf32>, vector<2x56xf32> -> vector<2x56xf32>
    %33 = arith.addf %31, %32 : vector<2x56xf32>
    %cst_34 = arith.constant 0.000000e+00 : f32
    %34 = vector.broadcast %cst_34 : f32 to vector<2x56xf32>
    %35 = arith.maximumf %33, %34 : vector<2x56xf32>
    %c6_35 = arith.constant 6 : index
    %c0_36 = arith.constant 0 : index
    %36 = vector.load %arg11[%c6_35, %c0_36] : memref<14x56xf32, #tpu.memory_space<vmem>>, vector<2x56xf32>
    tpu.vector_store %arg11[%c6_35, %c0_36], %35 {strides = array<i32>} : memref<14x56xf32, #tpu.memory_space<vmem>>, vector<2x56xf32>,
    %c8 = arith.constant 8 : index
    %c0_37 = arith.constant 0 : index
    %37 = vector.load %arg10[%c8, %c0_37] : memref<14x56xf32, #tpu.memory_space<vmem>>, vector<2x56xf32>
    %cst_38 = arith.constant dense<0.000000e+00> : vector<2x56xf32>
    %38 = tpu.matmul %35, %11, %cst_38 {dimension_numbers = #tpu.dot_dimension_numbers<[1], [0], [0], [1], [0, 0, 1, 1], [], []>} : vector<2x56xf32>, vector<56x56xf32>, vector<2x56xf32> -> vector<2x56xf32>
    %39 = arith.addf %37, %38 : vector<2x56xf32>
    %cst_39 = arith.constant 0.000000e+00 : f32
    %40 = vector.broadcast %cst_39 : f32 to vector<2x56xf32>
    %41 = arith.maximumf %39, %40 : vector<2x56xf32>
    %c8_40 = arith.constant 8 : index
    %c0_41 = arith.constant 0 : index
    %42 = vector.load %arg11[%c8_40, %c0_41] : memref<14x56xf32, #tpu.memory_space<vmem>>, vector<2x56xf32>
    tpu.vector_store %arg11[%c8_40, %c0_41], %41 {strides = array<i32>} : memref<14x56xf32, #tpu.memory_space<vmem>>, vector<2x56xf32>,
    %c10 = arith.constant 10 : index
    %c0_42 = arith.constant 0 : index
    %43 = vector.load %arg10[%c10, %c0_42] : memref<14x56xf32, #tpu.memory_space<vmem>>, vector<2x56xf32>
    %cst_43 = arith.constant dense<0.000000e+00> : vector<2x56xf32>
    %44 = tpu.matmul %41, %11, %cst_43 {dimension_numbers = #tpu.dot_dimension_numbers<[1], [0], [0], [1], [0, 0, 1, 1], [], []>} : vector<2x56xf32>, vector<56x56xf32>, vector<2x56xf32> -> vector<2x56xf32>
    %45 = arith.addf %43, %44 : vector<2x56xf32>
    %cst_44 = arith.constant 0.000000e+00 : f32
    %46 = vector.broadcast %cst_44 : f32 to vector<2x56xf32>
    %47 = arith.maximumf %45, %46 : vector<2x56xf32>
    %c10_45 = arith.constant 10 : index
    %c0_46 = arith.constant 0 : index
    %48 = vector.load %arg11[%c10_45, %c0_46] : memref<14x56xf32, #tpu.memory_space<vmem>>, vector<2x56xf32>
    tpu.vector_store %arg11[%c10_45, %c0_46], %47 {strides = array<i32>} : memref<14x56xf32, #tpu.memory_space<vmem>>, vector<2x56xf32>,
    %c12 = arith.constant 12 : index
    %c0_47 = arith.constant 0 : index
    %49 = vector.load %arg10[%c12, %c0_47] : memref<14x56xf32, #tpu.memory_space<vmem>>, vector<2x56xf32>
    %cst_48 = arith.constant dense<0.000000e+00> : vector<2x56xf32>
    %50 = tpu.matmul %47, %11, %cst_48 {dimension_numbers = #tpu.dot_dimension_numbers<[1], [0], [0], [1], [0, 0, 1, 1], [], []>} : vector<2x56xf32>, vector<56x56xf32>, vector<2x56xf32> -> vector<2x56xf32>
    %51 = arith.addf %49, %50 : vector<2x56xf32>
    %cst_49 = arith.constant 0.000000e+00 : f32
    %52 = vector.broadcast %cst_49 : f32 to vector<2x56xf32>
    %53 = arith.maximumf %51, %52 : vector<2x56xf32>
    %c12_50 = arith.constant 12 : index
    %c0_51 = arith.constant 0 : index
    %54 = vector.load %arg11[%c12_50, %c0_51] : memref<14x56xf32, #tpu.memory_space<vmem>>, vector<2x56xf32>
    tpu.vector_store %arg11[%c12_50, %c0_51], %53 {strides = array<i32>} : memref<14x56xf32, #tpu.memory_space<vmem>>, vector<2x56xf32>,
    %c0_52 = arith.constant 0 : index
    %c0_53 = arith.constant 0 : index
    %55 = vector.load %arg11[%c0_52, %c0_53] : memref<14x56xf32, #tpu.memory_space<vmem>>, vector<14x56xf32>
    %c0_54 = arith.constant 0 : index
    %c0_55 = arith.constant 0 : index
    %56 = vector.load %arg7[%c0_54, %c0_55] : memref<56x8xf32, #tpu.memory_space<vmem>>, vector<56x8xf32>
    %cst_56 = arith.constant dense<0.000000e+00> : vector<14x8xf32>
    %57 = tpu.matmul %55, %56, %cst_56 {dimension_numbers = #tpu.dot_dimension_numbers<[1], [0], [0], [1], [0, 0, 1, 1], [], []>} : vector<14x56xf32>, vector<56x8xf32>, vector<14x8xf32> -> vector<14x8xf32>
    %c0_57 = arith.constant 0 : index
    %c0_58 = arith.constant 0 : index
    %58 = vector.load %arg8[%c0_57, %c0_58] : memref<1x8xf32, #tpu.memory_space<vmem>>, vector<1x8xf32>
    %59 = vector.broadcast %58 : vector<1x8xf32> to vector<14x8xf32>
    %60 = arith.addf %57, %59 : vector<14x8xf32>
    %c0_59 = arith.constant 0 : index
    %c0_60 = arith.constant 0 : index
    %61 = vector.load %arg9[%c0_59, %c0_60] : memref<14x8xf32, #tpu.memory_space<vmem>>, vector<14x8xf32>
    tpu.vector_store %arg9[%c0_59, %c0_60], %60 {strides = array<i32>} : memref<14x8xf32, #tpu.memory_space<vmem>>, vector<14x8xf32>,
    return
  }
}

</mosaic_0001>

<bundles_post_ra>
// kernel: infodpcca_forward.1
= control target key start
LH: loop header
LB: loop body
LE: loop exit
PB: predicated region body
PF: predicated region fallthrough
CT: control target
= control target key end

     0   :  { %vm47_vm0 = vcmask 1043456   ;;  %vm40_vm1 = vcmask 97280   ;;  %vm1204_vm2 = vmmov 1   ;;  %vm126_vm4 = vcmask 130048   ;;  %s1438_s3 = inlined_call_operand.vmem [shape: f32[12,56], index: 3, kind: input, shape index: {}]   ;;  %s1439_s2 = inlined_call_operand.vmem [shape: f32[16,56], index: 2, kind: input, shape index: {}]   ;;  %s1440_s1 = inlined_call_operand.vmem [shape: f32[14,12], index: 1, kind: input, shape index: {}]   ;;  %s1441_s0 = inlined_call_operand.vmem [shape: f32[14,16], index: 0, kind: input, shape index: {}]   ;;  %s1442_s4 = inlined_call_operand.vmem [shape: f32[56,56], index: 4, kind: input, shape index: {}]   ;;  %s1443_s6 = inlined_call_operand.vmem [shape: f32[2,56], index: 6, kind: input, shape index: {}]   ;;  %s1444_s5 = inlined_call_operand.vmem [shape: f32[1,56], index: 5, kind: input, shape index: {}]   ;;  %s1445_s7 = inlined_call_operand.vmem [shape: f32[56,8], index: 7, kind: input, shape index: {}]   ;;  %s1446_s8 = inlined_call_operand.vmem [shape: f32[1,8], index: 8, kind: input, shape index: {}]   ;;  %s1447_s9 = inlined_call_operand.vmem [shape: f32[14,8], index: 9, kind: output, shape index: {}]  }
   0x1   :  { %v38_v0 = vld [vmem:[%s1438_s3] sm:$0xff]  ;;  %v39_v1 = vld [vmem:[%s1438_s3 + $0x8] sm:$0xf]  ;;  %vm1114_vm3 = vmpackc.low %vm47_vm0, %vm1204_vm2  ;;  %v1205_v13 = vmov 0.0|0.0   ;;  %vm1206_vm5 = vmmov 0   ;;  %v1207_v19 = vmov 0.0  }
   0x2   :  { %v1113_v2 = vpack.c.bf16 %v39_v1, %v38_v0  ;;  %v34_v3 = vld [vmem:[%s1439_s2] sm:$0xff]  ;;  %v35_v4 = vld [vmem:[%s1439_s2 + $0x8] sm:$0xff]  ;;  %v223_v14 = vld [vmem:[%s1442_s4 + $0x10] sm:$0xff]  ;;  %vm217_vm6 = vcmask 457728   ;;  %vm219_vm7 = vcmask 455680   ;;  %vm305_vm8 = vcmask 451584  }
   0x3   :  { %v36_v5 = vld [vmem:[%s1440_s1] sm:$0xff]  ;;  %v1119_v6 = vpack.c.bf16 %v35_v4, %v34_v3  ;;  %v222_v9 = vld [vmem:[%s1442_s4 + $0x8] sm:$0xff]  ;;  %v224_v15 = vld [vmem:[%s1442_s4 + $0x18] sm:$0xff]  ;;  %vm868_vm9 = vcmask 62464   ;;  %vm866_vm10 = vcmask 64512  }
   0x4   :  { %967 = vmatprep.mubr.msk.f32.mxu1 %vm40_vm1, %v36_v5  ;;  %v32_v7 = vld [vmem:[%s1441_s0] sm:$0xff]  ;;  %1115 = vmatprep.subr.msk.bf16.mxu1 %vm1114_vm3, %v1113_v2  ;;  %v37_v10 = vld [vmem:[%s1440_s1 + $0x8] sm:$0x3f]  ;;  %v1303_v16 = vpack.c.bf16 %v224_v15, %v223_v14  ;;  %v1329_v21 = vld [vmem:[%s1442_s4 + $0x30] sm:$0xff] }
   0x5   :  { %974 = vmatprep.mubr.msk.f32.mxu0 %vm126_vm4, %v32_v7  ;;  %v221_v8 = vld [vmem:[%s1442_s4] sm:$0xff]  ;;  %1120 = vmatprep.subr.bf16.mxu0 %v1119_v6  ;;  %v33_v12 = vld [vmem:[%s1441_s0 + $0x8] sm:$0x3f]  ;;  %v774_v3 = vld [vmem:[%s1445_s7 + $0x18] sm:$0xff] }
   0x6   :  { %1118 = vmatpush3.bf16.msk.msra.mxu1 %vm1114_vm3, %v1113_v2  ;;  %v1287_v11 = vpack.c.bf16 %v222_v9, %v221_v8  ;;  %1122 = vmatpush3.bf16.msra.mxu0 %v1119_v6  ;;  %v225_v17 = vld [vmem:[%s1442_s4 + $0x20] sm:$0xff]  ;;  %v226_v18 = vld [vmem:[%s1442_s4 + $0x28] sm:$0xff]  ;;  %v773_v2 = vld [vmem:[%s1445_s7 + $0x10] sm:$0xff] }
   0x7   :  { %1123 = vmatprep.subr.bf16.mxu1 %v1205_v13  ;;  %1132 = vmatprep.subr.bf16.mxu0 %v1205_v13  ;;  %v1319_v20 = vpack.c.bf16 %v226_v18, %v225_v17  ;;  %v228_v22 = vld [vmem:[%s1443_s6] sm:$0x3]  ;;  %v772_v59 = vld [vmem:[%s1445_s7 + $0x8] sm:$0xff]  ;;  %v1190_v4 = vpack.c.bf16 %v774_v3, %v773_v2  ;;  %v777_v8 = vld [vmem:[%s1445_s7 + $0x30] sm:$0xff] }
   0x8   :  { %v879_v25 = vld [vmem:[%s1444_s5] ss:$0 sm:$0xff]  ;;  %v776_v6 = vld [vmem:[%s1445_s7 + $0x28] sm:$0xff] }
   0x9   :  { %968 = vmatmul.mubr.msk.f32.vlgmr.msra.gmra.mrb[0].mxu1 %vm40_vm1, %v37_v10  ;;  %975 = vmatmul.mubr.msk.f32.vlgmr.msra.gmra.mrb[0].mxu0 %vm126_vm4, %v33_v12  ;;  %v771_v58 = vld [vmem:[%s1445_s7] sm:$0xff] }
   0xa   :  { %1125 = vmatpush3.bf16.msra.mxu1 %v1287_v11  ;;  %991 = vmatprep.mubr.msk.f32.mxu1 %vm1206_vm5, %v1207_v19  ;;  %v1186_v60 = vpack.c.bf16 %v772_v59, %v771_v58  ;;  %v775_v5 = vld [vmem:[%s1445_s7 + $0x20] sm:$0xff] }
   0xb   :  { %1126 = vmatprep.subr.bf16.mxu1 %v1205_v13  ;;  %1134 = vmatpush3.bf16.msra.mxu0 %v1287_v11  ;;  %v1194_v7 = vpack.c.bf16 %v776_v6, %v775_v5  ;;  %v887_v15 = vld [vmem:[%s1446_s8] ss:$0 sm:$0xff] }
   0xc   :  { %1008 = vmatprep.mubr.msk.f32.mxu0 %vm1206_vm5, %v1207_v19  ;;  %1135 = vmatprep.subr.bf16.mxu0 %v1205_v13 }
   0xe   :  { %1128 = vmatpush3.bf16.msra.mxu1 %v1303_v16 }
   0xf   :  { %1129 = vmatprep.subr.bf16.mxu1 %v1205_v13  ;;  %1137 = vmatpush3.bf16.msra.mxu0 %v1303_v16 }
  0x10   :  { %1138 = vmatprep.subr.bf16.mxu0 %v1205_v13 }
  0x12   :  { %1131 = vmatpush3.bf16.msra.mxu1 %v1319_v20 }
  0x13   :  { %989 = vmatprep.subr.mxu1 %v1207_v19  ;;  %1140 = vmatpush3.bf16.msra.mxu0 %v1319_v20 }
  0x14   :  { %1006 = vmatprep.subr.mxu0 %v1207_v19 }
  0x16   :  { %990 = vmatpush3.msra.mxu1 %v1329_v21 }
  0x17   :  { %992 = vmatmul.mubr.msk.f32.vlgmr.msra.gmra.mrb[2].mxu1 %vm217_vm6, %v228_v22  ;;  %1141 = vmatprep.subr.bf16.mxu1 %v1205_v13 }
  0x18   :  { %1007 = vmatpush3.msra.mxu0 %v1329_v21  ;;  %1143 = vmatpush3.bf16.msra.mxu1 %v1287_v11 }
  0x19   :  { %1144 = vmatprep.subr.bf16.mxu1 %v1205_v13  ;;  %1025 = vmatprep.mubr.msk.f32.mxu1 %vm1206_vm5, %v1207_v19 }
  0x1a   :  { %1150 = vmatprep.subr.bf16.mxu0 %v1205_v13 }
  0x1c   :  { %1146 = vmatpush3.bf16.msra.mxu1 %v1303_v16 }
  0x1d   :  { %1147 = vmatprep.subr.bf16.mxu1 %v1205_v13 }
  0x20   :  { %1149 = vmatpush3.bf16.msra.mxu1 %v1319_v20 }
  0x21   :  { %1023 = vmatprep.subr.mxu1 %v1207_v19 }
  0x24   :  { %1024 = vmatpush3.msra.mxu1 %v1329_v21 }
  0x25   :  { %1159 = vmatprep.subr.bf16.mxu1 %v1205_v13 }
  0xdc   :  { %v969_v23 = vpop.f32.mrb[0].mxu1  ;;  %v976_v24 = vpop.f32.mrb[0].mxu0 }
  0xdd   :  { %v117_v26 = vpop.f32.mrb[1].mxu1  ;;  %v205_v27 = vadd.f32 %v976_v24, %v969_v23  ;;  %v199_v28 = vpop.f32.mrb[1].mxu0 }
  0xde   :  { %v200_v29 = vadd.f32 %v199_v28, %v117_v26 }
  0xdf   :  { %v216_v30 = vadd.f32 %v879_v25, %v205_v27 }
  0xe0   :  { %v215_v31 = vadd.f32 %v879_v25, %v200_v29 }
  0xe1   :  { %220 = vst.msk [vmem:[#allocation2 + $0x8] sm:$0x3f] %vm219_vm7, %v216_v30 }
  0xe2   :  { %218 = vst.msk [vmem:[#allocation2] sm:$0xff] %vm217_vm6, %v215_v31 }
  0xe8   :  { %v538_v52 = vld [vmem:[#allocation2 + $0x8] sm:$0x3]  ;;  %v615_v61 = vld [vmem:[#allocation2 + $0xa] sm:$0x3]  ;;  %v692_v9 = vld [vmem:[#allocation2 + $0xc] sm:$0x3] }
  0xe9   :  { %v229_v32 = vld [vmem:[#allocation2] sm:$0x3]  ;;  %v307_v37 = vld [vmem:[#allocation2 + $0x2] sm:$0x3]  ;;  %v384_v42 = vld [vmem:[#allocation2 + $0x4] sm:$0x3] }
  0xea   :  { %v299_v33 = vpop.f32.mrb[2].mxu1  ;;  %v461_v47 = vld [vmem:[#allocation2 + $0x6] sm:$0x3] }
  0xeb   :  { %v303_v34 = vadd.f32 %v299_v33, %v229_v32  ;;  %v993_v35 = vpop.f32.mrb[3].mxu1 }
  0xed   :  { %v304_v36 = vmax.f32 %v303_v34, 0.0 }
  0xef   :  { %306 = vst.msk [vmem:[#allocation3] sm:$0x3] %vm305_vm8, %v304_v36  ;;  %1009 = vmatmul.mubr.msk.f32.vlgmr.msra.gmra.mrb[2].mxu0 %vm217_vm6, %v304_v36 }
  0xf0   :  { %1152 = vmatpush3.bf16.msra.mxu0 %v1287_v11  ;;  %1042 = vmatprep.mubr.msk.f32.mxu0 %vm1206_vm5, %v1207_v19 }
  0xf1   :  { %1153 = vmatprep.subr.bf16.mxu0 %v1205_v13 }
  0xf4   :  { %1155 = vmatpush3.bf16.msra.mxu0 %v1303_v16 }
  0xf5   :  { %1156 = vmatprep.subr.bf16.mxu0 %v1205_v13 }
  0xf8   :  { %1158 = vmatpush3.bf16.msra.mxu0 %v1319_v20 }
  0xf9   :  { %1040 = vmatprep.subr.mxu0 %v1207_v19 }
  0xfc   :  { %1041 = vmatpush3.msra.mxu0 %v1329_v21 }
  0xfd   :  { %1168 = vmatprep.subr.bf16.mxu0 %v1205_v13 }
 0x1c2   :  { %v377_v38 = vpop.f32.mrb[2].mxu0 }
 0x1c3   :  { %v381_v39 = vadd.f32 %v377_v38, %v307_v37  ;;  %v1010_v40 = vpop.f32.mrb[3].mxu0 }
 0x1c5   :  { %v382_v41 = vmax.f32 %v381_v39, 0.0 }
 0x1c7   :  { %383 = vst.msk [vmem:[#allocation3 + $0x2] sm:$0x3] %vm305_vm8, %v382_v41  ;;  %1026 = vmatmul.mubr.msk.f32.vlgmr.msra.gmra.mrb[4].mxu1 %vm217_vm6, %v382_v41 }
 0x1c8   :  { %1161 = vmatpush3.bf16.msra.mxu1 %v1287_v11  ;;  %1059 = vmatprep.mubr.msk.f32.mxu1 %vm1206_vm5, %v1207_v19 }
 0x1c9   :  { %1162 = vmatprep.subr.bf16.mxu1 %v1205_v13 }
 0x1cc   :  { %1164 = vmatpush3.bf16.msra.mxu1 %v1303_v16 }
 0x1cd   :  { %1165 = vmatprep.subr.bf16.mxu1 %v1205_v13 }
 0x1d0   :  { %1167 = vmatpush3.bf16.msra.mxu1 %v1319_v20 }
 0x1d1   :  { %1057 = vmatprep.subr.mxu1 %v1207_v19 }
 0x1d4   :  { %1058 = vmatpush3.msra.mxu1 %v1329_v21 }
 0x1d5   :  { %1177 = vmatprep.subr.bf16.mxu1 %v1205_v13 }
 0x29a   :  { %v454_v43 = vpop.f32.mrb[4].mxu1 }
 0x29b   :  { %v458_v44 = vadd.f32 %v454_v43, %v384_v42  ;;  %v1027_v45 = vpop.f32.mrb[5].mxu1 }
 0x29d   :  { %v459_v46 = vmax.f32 %v458_v44, 0.0 }
 0x29f   :  { %460 = vst.msk [vmem:[#allocation3 + $0x4] sm:$0x3] %vm305_vm8, %v459_v46  ;;  %1043 = vmatmul.mubr.msk.f32.vlgmr.msra.gmra.mrb[4].mxu0 %vm217_vm6, %v459_v46 }
 0x2a0   :  { %1170 = vmatpush3.bf16.msra.mxu0 %v1287_v11  ;;  %1076 = vmatprep.mubr.msk.f32.mxu0 %vm1206_vm5, %v1207_v19 }
 0x2a1   :  { %1171 = vmatprep.subr.bf16.mxu0 %v1205_v13 }
 0x2a4   :  { %1173 = vmatpush3.bf16.msra.mxu0 %v1303_v16 }
 0x2a5   :  { %1174 = vmatprep.subr.bf16.mxu0 %v1205_v13 }
 0x2a8   :  { %1176 = vmatpush3.bf16.msra.mxu0 %v1319_v20 }
 0x2a9   :  { %1074 = vmatprep.subr.mxu0 %v1207_v19 }
 0x2ac   :  { %1075 = vmatpush3.msra.mxu0 %v1329_v21 }
 0x2ad   :  { %1187 = vmatprep.subr.bf16.mxu0 %v1186_v60 }
 0x372   :  { %v531_v48 = vpop.f32.mrb[4].mxu0 }
 0x373   :  { %v535_v49 = vadd.f32 %v531_v48, %v461_v47  ;;  %v1044_v50 = vpop.f32.mrb[5].mxu0 }
 0x375   :  { %v536_v51 = vmax.f32 %v535_v49, 0.0 }
 0x377   :  { %537 = vst.msk [vmem:[#allocation3 + $0x6] sm:$0x3] %vm305_vm8, %v536_v51  ;;  %1060 = vmatmul.mubr.msk.f32.vlgmr.msra.gmra.mrb[6].mxu1 %vm217_vm6, %v536_v51 }
 0x378   :  { %1179 = vmatpush3.bf16.msra.mxu1 %v1287_v11  ;;  %1093 = vmatprep.mubr.msk.f32.mxu1 %vm1206_vm5, %v1207_v19 }
 0x379   :  { %1180 = vmatprep.subr.bf16.mxu1 %v1205_v13 }
 0x37c   :  { %1182 = vmatpush3.bf16.msra.mxu1 %v1303_v16 }
 0x37d   :  { %1183 = vmatprep.subr.bf16.mxu1 %v1205_v13 }
 0x37e   :  { %v769_v57 = vld [vmem:[#allocation3] sm:$0xff] }
 0x380   :  { %1185 = vmatpush3.bf16.msra.mxu1 %v1319_v20 }
 0x381   :  { %1091 = vmatprep.subr.mxu1 %v1207_v19 }
 0x384   :  { %1092 = vmatpush3.msra.mxu1 %v1329_v21 }
 0x44a   :  { %v608_v53 = vpop.f32.mrb[6].mxu1 }
 0x44b   :  { %v612_v54 = vadd.f32 %v608_v53, %v538_v52  ;;  %v1061_v55 = vpop.f32.mrb[7].mxu1 }
 0x44d   :  { %v613_v56 = vmax.f32 %v612_v54, 0.0 }
 0x44f   :  { %614 = vst.msk [vmem:[#allocation3 + $0x8] sm:$0x3] %vm305_vm8, %v613_v56  ;;  %1077 = vmatmul.mubr.msk.f32.vlgmr.msra.gmra.mrb[6].mxu0 %vm217_vm6, %v613_v56 }
 0x450   :  { %1110 = vmatprep.mubr.msk.f32.mxu0 %vm217_vm6, %v769_v57  ;;  %1189 = vmatpush3.bf16.msra.mxu0 %v1186_v60 }
 0x451   :  { %1191 = vmatprep.subr.bf16.mxu0 %v1190_v4 }
 0x454   :  { %1193 = vmatpush3.bf16.msra.mxu0 %v1190_v4 }
 0x455   :  { %1195 = vmatprep.subr.bf16.mxu0 %v1194_v7 }
 0x458   :  { %1197 = vmatpush3.bf16.msra.mxu0 %v1194_v7 }
 0x459   :  { %1108 = vmatprep.subr.mxu0 %v777_v8 }
 0x45c   :  { %1109 = vmatpush3.msra.mxu0 %v777_v8 }
 0x522   :  { %v685_v62 = vpop.f32.mrb[6].mxu0 }
 0x523   :  { %v689_v63 = vadd.f32 %v685_v62, %v615_v61  ;;  %v1078_v0 = vpop.f32.mrb[7].mxu0 }
 0x525   :  { %v690_v1 = vmax.f32 %v689_v63, 0.0 }
 0x527   :  { %691 = vst.msk [vmem:[#allocation3 + $0xa] sm:$0x3] %vm305_vm8, %v690_v1  ;;  %1094 = vmatmul.mubr.msk.f32.vlgmr.msra.gmra.mrb[8].mxu1 %vm217_vm6, %v690_v1 }
 0x5fa   :  { %v762_v10 = vpop.f32.mrb[8].mxu1 }
 0x5fb   :  { %v766_v11 = vadd.f32 %v762_v10, %v692_v9  ;;  %v1095_v12 = vpop.f32.mrb[9].mxu1 }
 0x5fd   :  { %v767_v13 = vmax.f32 %v766_v11, 0.0 }
 0x5ff   :  { %768 = vst.msk [vmem:[#allocation3 + $0xc] sm:$0x3] %vm305_vm8, %v767_v13 }
 0x606   :  { %v770_v14 = vld [vmem:[#allocation3 + $0x8] sm:$0x3f] }
 0x607   :  { %1111 = vmatmul.mubr.msk.f32.vlgmr.msra.gmra.mrb[8].mxu0 %vm217_vm6, %v770_v14 }
 0x6da   :  { %v1112_v16 = vpop.f32.mrb[8].mxu0 }
 0x6db   :  { %v863_v17 = vadd.f32 %v1112_v16, %v887_v15  ;;  %v857_v18 = vpop.f32.mrb[9].mxu0 }
 0x6dc   :  { %v858_v19 = vadd.f32 %v887_v15, %v857_v18 }
 0x6dd   :  { %869 = vst.msk [vmem:[%s1447_s9 + $0x8] sm:$0x3f] %vm868_vm9, %v863_v17 }
 0x6de   :  { %867 = vst.msk [vmem:[%s1447_s9] sm:$0xff] %vm866_vm10, %v858_v19 }

</bundles_post_ra>
